<compile_context>
chip_gen: v7x
topology: tpu7x:2x2x1
jax: 0.10.0
libtpu: 0.0.40
codegen_flags: <defaults>
</compile_context>

<pallas_src>
import math
from functools import partial

import jax
import jax.numpy as jnp
from jax.experimental import pallas as pl
from jax.experimental.pallas import tpu as pltpu


# ------------------------------------------------------------------ kernels ---
def _layer_norm(z, gamma, beta, eps):
    # z: (TILE_R, H) f32; gamma/beta: (1, H) f32. Biased variance (PyTorch LN).
    mean = jnp.mean(z, axis=-1, keepdims=True)
    zc = z - mean
    var = jnp.mean(zc * zc, axis=-1, keepdims=True)
    inv = jax.lax.rsqrt(var + eps)
    return zc * inv * gamma + beta


def _add_norm_kernel(x_ref, y_ref, gamma_ref, beta_ref, o_ref, *, eps):
    x = x_ref[...].astype(jnp.float32)
    y = y_ref[...].astype(jnp.float32)
    g = gamma_ref[...].astype(jnp.float32)
    b = beta_ref[...].astype(jnp.float32)
    o_ref[...] = _layer_norm(y + x, g, b, eps).astype(o_ref.dtype)


def _add_norm_dropout_kernel(x_ref, y_ref, mask_ref, gamma_ref, beta_ref, o_ref,
                             *, eps):
    x = x_ref[...].astype(jnp.float32)
    y = y_ref[...].astype(jnp.float32)
    g = gamma_ref[...].astype(jnp.float32)
    b = beta_ref[...].astype(jnp.float32)
    # mask holds 0.0 (dropped) or 1/(1-p) (kept): one multiply + one add.
    z = y * mask_ref[...] + x
    o_ref[...] = _layer_norm(z, g, b, eps).astype(o_ref.dtype)


# ----------------------------------------------------------------- wrapper ---
def _pick_tile_rows(n_rows, hidden, bytes_per_elem=4, max_tile_bytes=2 << 20):
    """Largest power-of-two row tile that divides n_rows and keeps each
    per-array tile <= ~2 MiB (double-buffered tiles stay well inside the
    scoped-VMEM default on every generation, including v7x)."""
    max_rows = max(8, max_tile_bytes // max(1, hidden * bytes_per_elem))
    for t in (2048, 1024, 512, 256, 128, 64, 32, 16, 8):
        if t <= max_rows and n_rows % t == 0:
            return t
    return n_rows  # tiny/odd row counts: single block spanning all rows


def dropout_mask(key, shape, dropout_p):
    """Inverted-dropout keep mask with values {0, 1/(1-p)} (nn.Dropout train)."""
    keep = jax.random.bernoulli(key, 1.0 - dropout_p, shape)
    return keep.astype(jnp.float32) * (1.0 / (1.0 - dropout_p))


def add_norm(x, y, gamma, beta, *, dropout_p=0.0, eps=1e-5, key=None):
    """LayerNorm(dropout(Y) + X) over the last dim. x, y: (..., H)."""
    assert x.shape == y.shape, "X and Y must have identical shapes"
    *lead, hidden = x.shape
    n_rows = int(math.prod(lead)) if lead else 1

    x2 = x.reshape(n_rows, hidden)
    y2 = y.reshape(n_rows, hidden)
    g2 = jnp.asarray(gamma, jnp.float32).reshape(1, hidden)
    b2 = jnp.asarray(beta, jnp.float32).reshape(1, hidden)

    tile_r = _pick_tile_rows(n_rows, hidden)
    grid = (n_rows // tile_r,)

    row_spec = pl.BlockSpec((tile_r, hidden), lambda i: (i, 0))   # streamed tiles
    par_spec = pl.BlockSpec((1, hidden), lambda i: (0, 0))        # resident params

    if dropout_p > 0.0:
        if key is None:
            key = jax.random.PRNGKey(0)
        mask = dropout_mask(key, x.shape, float(dropout_p)).reshape(n_rows, hidden)
        kernel = partial(_add_norm_dropout_kernel, eps=float(eps))
        in_specs = [row_spec, row_spec, row_spec, par_spec, par_spec]
        args = (x2, y2, mask, g2, b2)
    else:
        kernel = partial(_add_norm_kernel, eps=float(eps))
        in_specs = [row_spec, row_spec, par_spec, par_spec]
        args = (x2, y2, g2, b2)

    out2 = pl.pallas_call(
        kernel,
        out_shape=jax.ShapeDtypeStruct((n_rows, hidden), x.dtype),
        grid=grid,
        in_specs=in_specs,
        out_specs=row_spec,
        compiler_params=pltpu.CompilerParams(
            dimension_semantics=("parallel",)),
    )(*args)
    return out2.reshape(x.shape)


# -------------------------------------------------------------------- main ---
if __name__ == "__main__":
    batch, seq_len, num_hiddens = 2, 8, 128   # H=128 -> lane-dense last dim
    dropout_p = 0.1
    eps = 1e-5

    root = jax.random.PRNGKey(0)
    kx, ky, kmask = jax.random.split(root, 3)
    x = jax.random.normal(kx, (batch, seq_len, num_hiddens), dtype=jnp.float32)
    y = jax.random.normal(ky, (batch, seq_len, num_hiddens), dtype=jnp.float32)
    gamma = jnp.ones((num_hiddens,), jnp.float32)   # nn.LayerNorm default weight
    beta = jnp.zeros((num_hiddens,), jnp.float32)   # nn.LayerNorm default bias

    def ref_add_norm(x, y, gamma, beta, mask=None):
        z = (y * mask if mask is not None else y) + x
        mean = z.mean(-1, keepdims=True)
        var = ((z - mean) ** 2).mean(-1, keepdims=True)
        return (z - mean) / jnp.sqrt(var + eps) * gamma + beta

    # 1) eval mode (dropout_p = 0): must match plain LayerNorm(X + Y).
    out_eval = add_norm(x, y, gamma, beta, dropout_p=0.0, eps=eps)
    jax.block_until_ready(out_eval)
    assert jnp.allclose(out_eval, ref_add_norm(x, y, gamma, beta),
                        atol=1e-5, rtol=1e-5), "eval-mode mismatch"

    # 2) train mode (dropout_p = 0.1) with a deterministic key: the wrapper and
    #    the reference build the identical {0, 1/(1-p)} mask from `kmask`.
    out_train = add_norm(x, y, gamma, beta, dropout_p=dropout_p, eps=eps, key=kmask)
    jax.block_until_ready(out_train)
    mask = dropout_mask(kmask, x.shape, dropout_p)
    assert jnp.allclose(out_train, ref_add_norm(x, y, gamma, beta, mask=mask),
                        atol=1e-5, rtol=1e-5), "train-mode mismatch"

    print("KERNEL_OK")
</pallas_src>

<mosaic_0001>
module attributes {stable_mosaic.version = 11 : i64} {
  func.func @_add_norm_kernel(%arg0: i32, %arg1: memref<16x128xf32, #tpu.memory_space<vmem>>, %arg2: memref<16x128xf32, #tpu.memory_space<vmem>>, %arg3: memref<1x128xf32, #tpu.memory_space<vmem>>, %arg4: memref<1x128xf32, #tpu.memory_space<vmem>>, %arg5: memref<16x128xf32, #tpu.memory_space<vmem>>) attributes {dimension_semantics = [#tpu.dimension_semantics<parallel>], iteration_bounds = array<i64: 1>, scalar_prefetch = 0 : i64, scratch_operands = 0 : i64, tpu.core_type = #tpu.core_type<tc>, window_params = [{transform_indices = @transform_0, window_bounds = array<i64: 16, 128>}, {transform_indices = @transform_1, window_bounds = array<i64: 16, 128>}, {pipeline_mode = #tpu.pipeline_mode<synchronous>, transform_indices = @transform_2, window_bounds = array<i64: 1, 128>}, {pipeline_mode = #tpu.pipeline_mode<synchronous>, transform_indices = @transform_3, window_bounds = array<i64: 1, 128>}, {transform_indices = @transform_4, window_bounds = array<i64: 16, 128>}]} {
    %c0 = arith.constant 0 : index
    %c0_0 = arith.constant 0 : index
    %0 = vector.load %arg1[%c0, %c0_0] : memref<16x128xf32, #tpu.memory_space<vmem>>, vector<16x128xf32>
    %c0_1 = arith.constant 0 : index
    %c0_2 = arith.constant 0 : index
    %1 = vector.load %arg2[%c0_1, %c0_2] : memref<16x128xf32, #tpu.memory_space<vmem>>, vector<16x128xf32>
    %c0_3 = arith.constant 0 : index
    %c0_4 = arith.constant 0 : index
    %2 = vector.load %arg3[%c0_3, %c0_4] : memref<1x128xf32, #tpu.memory_space<vmem>>, vector<1x128xf32>
    %c0_5 = arith.constant 0 : index
    %c0_6 = arith.constant 0 : index
    %3 = vector.load %arg4[%c0_5, %c0_6] : memref<1x128xf32, #tpu.memory_space<vmem>>, vector<1x128xf32>
    %4 = arith.addf %1, %0 : vector<16x128xf32>
    %cst = arith.constant dense<0.000000e+00> : vector<16xf32>
    %5 = vector.multi_reduction <add>, %4, %cst [1] : vector<16x128xf32> to vector<16xf32>
    %6 = vector.shape_cast %5 : vector<16xf32> to vector<16x1xf32>
    %cst_7 = arith.constant 1.280000e+02 : f32
    %7 = vector.broadcast %cst_7 : f32 to vector<16x1xf32>
    %8 = arith.divf %6, %7 : vector<16x1xf32>
    %9 = vector.broadcast %8 : vector<16x1xf32> to vector<16x128xf32>
    %10 = arith.subf %4, %9 : vector<16x128xf32>
    %11 = arith.mulf %10, %10 : vector<16x128xf32>
    %cst_8 = arith.constant dense<0.000000e+00> : vector<16xf32>
    %12 = vector.multi_reduction <add>, %11, %cst_8 [1] : vector<16x128xf32> to vector<16xf32>
    %13 = vector.shape_cast %12 : vector<16xf32> to vector<16x1xf32>
    %cst_9 = arith.constant 1.280000e+02 : f32
    %14 = vector.broadcast %cst_9 : f32 to vector<16x1xf32>
    %15 = arith.divf %13, %14 : vector<16x1xf32>
    %cst_10 = arith.constant 9.99999974E-6 : f32
    %16 = vector.broadcast %cst_10 : f32 to vector<16x1xf32>
    %17 = arith.addf %15, %16 : vector<16x1xf32>
    %18 = math.rsqrt %17 : vector<16x1xf32>
    %19 = vector.broadcast %18 : vector<16x1xf32> to vector<16x128xf32>
    %20 = arith.mulf %10, %19 : vector<16x128xf32>
    %21 = vector.broadcast %2 : vector<1x128xf32> to vector<16x128xf32>
    %22 = arith.mulf %20, %21 : vector<16x128xf32>
    %23 = vector.broadcast %3 : vector<1x128xf32> to vector<16x128xf32>
    %24 = arith.addf %22, %23 : vector<16x128xf32>
    %c0_11 = arith.constant 0 : index
    %c0_12 = arith.constant 0 : index
    %25 = vector.load %arg5[%c0_11, %c0_12] : memref<16x128xf32, #tpu.memory_space<vmem>>, vector<16x128xf32>
    tpu.vector_store %arg5[%c0_11, %c0_12], %24 {strides = array<i32>} : memref<16x128xf32, #tpu.memory_space<vmem>>, vector<16x128xf32>,
    return
  }
  func.func @transform_0(%arg0: i32) -> (i32, i32) {
    %c0_i32 = arith.constant 0 : i32
    %c0_i32_0 = arith.constant 0 : i32
    return %arg0, %c0_i32 : i32, i32
  }
  func.func @transform_1(%arg0: i32) -> (i32, i32) {
    %c0_i32 = arith.constant 0 : i32
    %c0_i32_0 = arith.constant 0 : i32
    return %arg0, %c0_i32 : i32, i32
  }
  func.func @transform_2(%arg0: i32) -> (i32, i32) {
    %c0_i32 = arith.constant 0 : i32
    %c0_i32_0 = arith.constant 0 : i32
    %c0_i32_1 = arith.constant 0 : i32
    return %c0_i32, %c0_i32_0 : i32, i32
  }
  func.func @transform_3(%arg0: i32) -> (i32, i32) {
    %c0_i32 = arith.constant 0 : i32
    %c0_i32_0 = arith.constant 0 : i32
    %c0_i32_1 = arith.constant 0 : i32
    return %c0_i32, %c0_i32_0 : i32, i32
  }
  func.func @transform_4(%arg0: i32) -> (i32, i32) {
    %c0_i32 = arith.constant 0 : i32
    %c0_i32_0 = arith.constant 0 : i32
    return %arg0, %c0_i32 : i32, i32
  }
}

</mosaic_0001>

<bundles_post_ra>
// kernel: tpu_custom_call.1
= control target key start
LH: loop header
LB: loop body
LE: loop exit
PB: predicated region body
PF: predicated region fallthrough
CT: control target
= control target key end

     0   :  { %9 = vsyncpa [#allocation3], 0  ;;  %s277_s0 = inlined_call_operand.hbm [shape: f32[16,128], index: 0, kind: input, shape index: {}]   ;;  %s278_s1 = inlined_call_operand.hbm [shape: f32[16,128], index: 1, kind: input, shape index: {}]   ;;  %s279_s2 = inlined_call_operand.vmem [shape: f32[1,128], index: 2, kind: input, shape index: {}]   ;;  %s280_s3 = inlined_call_operand.vmem [shape: f32[1,128], index: 3, kind: input, shape index: {}]   ;;  %s281_s4 = inlined_call_operand.hbm [shape: f32[16,128], index: 4, kind: output, shape index: {}]  }
   0x1   :  { %10 = vsyncpa [#allocation6], 0 }
   0x2   :  { %11 = vsyncpa [#allocation4], 0  ;;  %s196_s15 = smov [#allocation2]   ;;  %s124_s19 = scalar_lea.hbm %s277_s0, 256 }
   0x3   :  { %s17_s16 = sshll.u32 %s196_s15, 4  ;;  %p125_p0 = scmp.ne.s32.totalorder %s277_s0, %s124_s19  ;;  %s18_s16 = int_to_ptr.vmem [resolvable:$true] %s17_s16 }
   0x4   :  { %p128_p1 = scmp.lt.u32.totalorder %s124_s19, %s277_s0 }
   0x6   :  { %p130_p2 = pnand %p128_p1, %p125_p0 }
   0x8   :  { %133 = shalt.err (!%p130_p2)
}
   0x9   :  { %s134_s24 = scalar_lea.vmem %s18_s16, 256  ;;  %p139_p4 = scmp.lt.s32.totalorder %s18_s16, %s18_s16 }
   0xa   :  { %p135_p3 = scmp.ne.s32.totalorder %s18_s16, %s134_s24  ;;  %p140_p5 = scmp.lt.s32.totalorder %s134_s24, %s134_s24 }
   0xc   :  { %p141_p6 = por %p140_p5, %p139_p4 }
   0xe   :  { %p142_p7 = pnand %p141_p6, %p135_p3 }
  0x10   :  { %145 = shalt.err (!%p142_p7)
}
  0x11   :  { %s197_s25 = smov 128   ;;  %s198_s26 = smov 8  }
  0x12   :  { %23 = dma.hbm_to_vmem [thread:$0]  %s277_s0, 256, %s18_s16, [#allocation3], %s197_s25, %s197_s25, %s198_s26  }
  0x13   :  { %s199_s29 = smov [#allocation5]   ;;  %s146_s7 = scalar_lea.hbm %s278_s1, 256 }
  0x14   :  { %s29_s30 = sshll.u32 %s199_s29, 4  ;;  %p147_p8 = scmp.ne.s32.totalorder %s278_s1, %s146_s7  ;;  %s30_s30 = int_to_ptr.vmem [resolvable:$true] %s29_s30 }
  0x15   :  { %p150_p9 = scmp.lt.u32.totalorder %s146_s7, %s278_s1 }
  0x17   :  { %p152_p10 = pnand %p150_p9, %p147_p8 }
  0x19   :  { %155 = shalt.err (!%p152_p10)
}
  0x1a   :  { %s156_s12 = scalar_lea.vmem %s30_s30, 256  ;;  %p161_p12 = scmp.lt.s32.totalorder %s30_s30, %s30_s30 }
  0x1b   :  { %p157_p11 = scmp.ne.s32.totalorder %s30_s30, %s156_s12  ;;  %p162_p13 = scmp.lt.s32.totalorder %s156_s12, %s156_s12 }
  0x1d   :  { %p163_p0 = por %p162_p13, %p161_p12 }
  0x1f   :  { %p164_p1 = pnand %p163_p0, %p157_p11 }
  0x21   :  { %167 = shalt.err (!%p164_p1)
}
  0x22   :  { %35 = dma.hbm_to_vmem [thread:$0]  %s278_s1, 256, %s30_s30, [#allocation6], %s197_s25, %s197_s25, %s198_s26  }
  0x23   :  { %190 = dma.done.wait [#allocation3], 256  }
  0x24   :  { %191 = vsyncadd [#allocation3], 4294967040 }
  0x25   :  { %192 = dma.done.wait [#allocation6], 256  }
  0x26   :  { %193 = vsyncadd [#allocation6], 4294967040  ;;  %v46_v0 = vld [vmem:[#allocation2] sm:$0xff]  ;;  %v48_v1 = vld [vmem:[#allocation5] sm:$0xff]  ;;  %s200_s17 = smov [#allocation7]  }
  0x27   :  { %v47_v2 = vld [vmem:[#allocation2 + $0x8] sm:$0xff]  ;;  %v52_v3 = vadd.f32 %v48_v1, %v46_v0  ;;  %v49_v4 = vld [vmem:[#allocation5 + $0x8] sm:$0xff]  ;;  %v113_v21 = vld [vmem:[%s279_s2] ss:$0 sm:$0xff]  ;;  %s100_s18 = sshll.u32 %s200_s17, 4  ;;  %s101_s18 = int_to_ptr.vmem [resolvable:$true] %s100_s18 }
  0x28   :  { %v53_v5 = vadd.f32 %v49_v4, %v47_v2  ;;  %v114_v23 = vld [vmem:[%s280_s3] ss:$0 sm:$0xff]  ;;  %s168_s19 = scalar_lea.vmem %s101_s18, 256  ;;  %p173_p3 = scmp.lt.s32.totalorder %s101_s18, %s101_s18 }
  0x29   :  { %54 = vadd.xlane.f32.xlu0 %v52_v3  ;;  %p169_p2 = scmp.ne.s32.totalorder %s101_s18, %s168_s19  ;;  %p174_p4 = scmp.lt.s32.totalorder %s168_s19, %s168_s19 }
  0x2b   :  { %p175_p5 = por %p174_p4, %p173_p3 }
  0x2d   :  { %56 = vadd.xlane.f32.xlu0 %v53_v5  ;;  %p176_p6 = pnand %p175_p5, %p169_p2 }
  0xb6   :  { %v55_v6 = vpop.xlane.xlu0 %54 }
  0xb7   :  { %v59_v7 = vmul.f32 0.0078125, %v55_v6 }
  0xb9   :  { %v61_v8 = vsub.f32 %v52_v3, %v59_v7 }
  0xba   :  { %v57_v9 = vpop.xlane.xlu0 %56 }
  0xbb   :  { %v60_v10 = vmul.f32 0.0078125, %v57_v9  ;;  %v63_v11 = vmul.f32 %v61_v8, %v61_v8 }
  0xbd   :  { %v62_v12 = vsub.f32 %v53_v5, %v60_v10  ;;  %65 = vadd.xlane.f32.xlu1 %v63_v11 }
  0xbf   :  { %v64_v13 = vmul.f32 %v62_v12, %v62_v12 }
  0xc1   :  { %67 = vadd.xlane.f32.xlu1 %v64_v13 }
 0x14a   :  { %v66_v14 = vpop.xlane.xlu1 %65 }
 0x14b   :  { %v69_v15 = vmul.f32 0.0078125, %v66_v14 }
 0x14d   :  { %v71_v16 = vadd.f32 1e-05, %v69_v15 }
 0x14e   :  { %v68_v17 = vpop.xlane.xlu1 %67 }
 0x14f   :  { %120 = vrsqrt.f32 %v71_v16  ;;  %v70_v18 = vmul.f32 0.0078125, %v68_v17 }
 0x151   :  { %v72_v19 = vadd.f32 1e-05, %v70_v18 }
 0x153   :  { %122 = vrsqrt.f32 %v72_v19 }
 0x159   :  { %v121_v20 = vpop.eup %120 }
 0x15a   :  { %v75_v22 = vmul.f32 %v121_v20, %v61_v8 }
 0x15c   :  { %v83_v24 = vmul.f32 %v113_v21, %v75_v22 }
 0x15d   :  { %v123_v25 = vpop.eup %122 }
 0x15e   :  { %v76_v26 = vmul.f32 %v123_v25, %v62_v12  ;;  %v91_v27 = vadd.f32 %v114_v23, %v83_v24 }
 0x160   :  { %v84_v28 = vmul.f32 %v113_v21, %v76_v26  ;;  %93 = vst [vmem:[#allocation7] sm:$0xff] %v91_v27 }
 0x162   :  { %v92_v29 = vadd.f32 %v114_v23, %v84_v28 }
 0x164   :  { %94 = vst [vmem:[#allocation7 + $0x8] sm:$0xff] %v92_v29 }
 0x165   :  { %179 = shalt.err (!%p176_p6)
}
 0x166   :  { %s180_s20 = scalar_lea.hbm %s281_s4, 256 }
 0x167   :  { %p181_p7 = scmp.ne.s32.totalorder %s281_s4, %s180_s20  ;;  %p184_p8 = scmp.lt.u32.totalorder %s180_s20, %s281_s4 }
 0x169   :  { %p186_p9 = pnand %p184_p8, %p181_p7 }
 0x16b   :  { %189 = shalt.err (!%p186_p9)
}
 0x16c   :  { %106 = dma.vmem_to_hbm [thread:$0]  %s101_s18, 256, %s281_s4, [#allocation4], %s197_s25, %s197_s25, %s198_s26  }
 0x16d   :  { %194 = dma.done.wait [#allocation4], 256  }
 0x16e   :  { %195 = vsyncadd [#allocation4], 4294967040 }
 0x16f   :  { %110 = vsyncpa [#allocation3], 1 }
 0x170   :  { %111 = vsyncpa [#allocation6], 1 }
 0x171   :  { %112 = vsyncpa [#allocation4], 1 }

</bundles_post_ra>
